<compile_context>
chip_gen: v7x
topology: tpu7x:2x2x1
jax: 0.10.0
libtpu: 0.0.40
codegen_flags: <defaults>
</compile_context>

<pallas_src>
import functools

import jax
import jax.numpy as jnp
from jax.experimental import pallas as pl
from jax.experimental.pallas import tpu as pltpu


def _round_up(x: int, m: int) -> int:
    return (x + m - 1) // m * m


def _make_kernel(N: int, TILE_I: int, TILE_J: int, top_k: int,
                 alpha: float, gamma: float, tie_break: bool):
    inv_lanes = 1.0 / 128.0

    def kernel(p_col_ref, t_col_ref, p_row_ref,
               wsum_ref, topsum_ref, topcnt_ref,
               rank_acc):
        i_blk = pl.program_id(0)
        j_blk = pl.program_id(1)
        n_j = pl.num_programs(1)

        @pl.when(j_blk == 0)
        def _init():
            rank_acc[...] = jnp.zeros_like(rank_acc)

        p_col = p_col_ref[...]            # (TILE_I, 1)  pred[i]
        p_row = p_row_ref[...]            # (1, TILE_J)  pred[j]

        # rank[i] += #{ j in tile : pred[j] > pred[i] }
        gt = p_row > p_col                # (TILE_I, TILE_J) bool, lazy broadcast
        if tie_break:
            # Optional stable tie-break on index (OFF by default; only matters
            # when pred has exact duplicates).
            eq = p_row == p_col
            i_glob = (jax.lax.broadcasted_iota(jnp.int32, (TILE_I, 1), 0)
                      + i_blk * TILE_I)
            j_glob = (jax.lax.broadcasted_iota(jnp.int32, (1, TILE_J), 1)
                      + j_blk * TILE_J)
            gt = jnp.logical_or(gt, jnp.logical_and(eq, j_glob < i_glob))

        # Offload the row reduction to the MXU: indicator @ ones -> exact f32
        # counts replicated across 128 lanes (keeps the accumulator lane-dense).
        ind = gt.astype(jnp.bfloat16)
        ones = jnp.ones((TILE_J, 128), dtype=jnp.bfloat16)
        rank_acc[...] += jnp.dot(ind, ones, preferred_element_type=jnp.float32)

        @pl.when(j_blk == n_j - 1)
        def _finalize():
            rank = rank_acc[...]                                 # (TILE_I, 128)
            is_top = rank < jnp.float32(top_k)
            weights = jnp.where(is_top, jnp.float32(alpha), jnp.float32(gamma))

            t = t_col_ref[...]                                   # (TILE_I, 1)
            mse = (p_col - t) * (p_col - t)                      # (TILE_I, 1)
            weighted = mse * weights                             # (TILE_I, 128)

            # validity mask: exclude padded samples from every sum
            idx = (jax.lax.broadcasted_iota(jnp.int32, (TILE_I, 1), 0)
                   + i_blk * TILE_I)
            valid = idx < N                                      # (TILE_I, 1)

            w_valid = jnp.where(valid, weighted, 0.0)
            # torch parity: top set is `weights == alpha` (covers alpha == gamma)
            alpha_mask = jnp.logical_and(valid, weights == jnp.float32(alpha))

            # each per-sample value is replicated across 128 lanes -> * 1/128
            w_sum = jnp.sum(w_valid) * inv_lanes
            top_sum = jnp.sum(jnp.where(alpha_mask, weighted, 0.0)) * inv_lanes
            top_cnt = jnp.sum(jnp.where(alpha_mask, 1.0, 0.0)) * inv_lanes

            wsum_ref[...] = jnp.broadcast_to(w_sum, wsum_ref.shape)
            topsum_ref[...] = jnp.broadcast_to(top_sum, topsum_ref.shape)
            topcnt_ref[...] = jnp.broadcast_to(top_cnt, topcnt_ref.shape)

    return kernel


@functools.partial(jax.jit,
                   static_argnames=("tau", "alpha", "gamma", "balance", "tie_break"))
def balanced_top_weighted_mse(pred, target, *, tau, alpha, gamma,
                              balance=0.7, tie_break=False):
    """pred, target: 1-D float arrays of the same length N."""
    N = pred.shape[0]
    top_k = int(N * tau)                      # matches int(len(pred) * self.tau)

    Np = _round_up(max(N, 1), 128)
    TILE_J = 512 if Np % 512 == 0 else (256 if Np % 256 == 0 else 128)
    TILE_I = 256 if Np % 256 == 0 else 128
    num_i = Np // TILE_I
    num_j = Np // TILE_J

    pred = pred.astype(jnp.float32)
    target = target.astype(jnp.float32)
    pad = Np - N
    p_pad = jnp.pad(pred, (0, pad), constant_values=-jnp.inf)   # never in top set
    t_pad = jnp.pad(target, (0, pad), constant_values=0.0)

    p_col = p_pad.reshape(Np, 1)
    t_col = t_pad.reshape(Np, 1)
    p_row = p_pad.reshape(1, Np)

    kernel = _make_kernel(N, TILE_I, TILE_J, top_k,
                          float(alpha), float(gamma), bool(tie_break))

    out_shape = tuple(jax.ShapeDtypeStruct((num_i, 8, 128), jnp.float32)
                      for _ in range(3))
    out_spec = pl.BlockSpec((1, 8, 128), lambda i, j: (i, 0, 0))

    w_out, ts_out, tc_out = pl.pallas_call(
        kernel,
        out_shape=out_shape,
        grid_spec=pltpu.PrefetchScalarGridSpec(
            num_scalar_prefetch=0,
            grid=(num_i, num_j),
            in_specs=[
                pl.BlockSpec((TILE_I, 1), lambda i, j: (i, 0)),   # pred column
                pl.BlockSpec((TILE_I, 1), lambda i, j: (i, 0)),   # target column
                pl.BlockSpec((1, TILE_J), lambda i, j: (0, j)),   # pred row (lane-dense)
            ],
            out_specs=[out_spec, out_spec, out_spec],
            scratch_shapes=[pltpu.VMEM((TILE_I, 128), jnp.float32)],
        ),
        compiler_params=pltpu.CompilerParams(
            dimension_semantics=("parallel", "arbitrary")),
        cost_estimate=pl.CostEstimate(
            flops=4 * Np * Np, transcendentals=0, bytes_accessed=16 * Np),
    )(p_col, t_col, p_row)

    # tiny scalar combine of the per-i-block partials (ordinary JAX)
    w_sum = jnp.sum(w_out[:, 0, 0])
    top_sum = jnp.sum(ts_out[:, 0, 0])
    top_cnt = jnp.sum(tc_out[:, 0, 0])

    top_loss = top_sum / top_cnt              # NaN if empty, same as torch .mean()
    overall_loss = w_sum / jnp.float32(N)
    return (jnp.float32(balance) * top_loss
            + jnp.float32(1.0 - balance) * overall_loss)


def _reference(pred, target, *, tau, alpha, gamma, balance=0.7):
    """Pure-JAX reference mirroring the PyTorch forward (for self-check)."""
    N = pred.shape[0]
    mse = (pred - target) ** 2
    order = jnp.argsort(-pred)                # descending
    top_k = int(N * tau)
    weights = jnp.zeros_like(target)
    weights = weights.at[order[:top_k]].set(alpha)
    weights = weights.at[order[top_k:]].set(gamma)
    weighted = mse * weights
    top_mask = (weights == alpha).astype(jnp.float32)
    top_loss = jnp.sum(weighted * top_mask) / jnp.sum(top_mask)
    overall_loss = jnp.mean(weighted)
    return balance * top_loss + (1.0 - balance) * overall_loss


if __name__ == "__main__":
    # Deterministic hyperparameters (module __init__ args; no learnable weights).
    tau, alpha, gamma, balance = 0.75, 3.0, 1.0, 0.7

    key = jax.random.PRNGKey(0)
    kp, kt = jax.random.split(key)
    N = 16
    pred = jax.random.normal(kp, (N,), dtype=jnp.float32)
    target = jax.random.normal(kt, (N,), dtype=jnp.float32)

    loss = balanced_top_weighted_mse(pred, target, tau=tau, alpha=alpha,
                                     gamma=gamma, balance=balance)
    loss = jax.block_until_ready(loss)

    ref = _reference(pred, target, tau=tau, alpha=alpha, gamma=gamma,
                     balance=balance)
    assert jnp.allclose(loss, ref, rtol=1e-5, atol=1e-5), (loss, ref)

    print("KERNEL_OK")
</pallas_src>

<mosaic_0001>
module attributes {stable_mosaic.version = 11 : i64} {
  func.func @kernel(%arg0: i32, %arg1: i32, %arg2: memref<128x1xf32, #tpu.memory_space<vmem>>, %arg3: memref<128x1xf32, #tpu.memory_space<vmem>>, %arg4: memref<1x128xf32, #tpu.memory_space<vmem>>, %arg5: memref<1x8x128xf32, #tpu.memory_space<vmem>>, %arg6: memref<1x8x128xf32, #tpu.memory_space<vmem>>, %arg7: memref<1x8x128xf32, #tpu.memory_space<vmem>>, %arg8: memref<128x128xf32, #tpu.memory_space<vmem>>) attributes {dimension_semantics = [#tpu.dimension_semantics<parallel>, #tpu.dimension_semantics<arbitrary>], iteration_bounds = array<i64: 1, 1>, scalar_prefetch = 0 : i64, scratch_operands = 1 : i64, tpu.core_type = #tpu.core_type<tc>, window_params = [{transform_indices = @transform_0, window_bounds = array<i64: 128, 1>}, {transform_indices = @transform_1, window_bounds = array<i64: 128, 1>}, {transform_indices = @transform_2, window_bounds = array<i64: 1, 128>}, {transform_indices = @transform_3, window_bounds = array<i64: 1, 8, 128>}, {transform_indices = @transform_4, window_bounds = array<i64: 1, 8, 128>}, {transform_indices = @transform_5, window_bounds = array<i64: 1, 8, 128>}]} {
    %c0_i32 = arith.constant 0 : i32
    %0 = arith.cmpi eq, %arg1, %c0_i32 : i32
    %1 = arith.extui %0 : i1 to i32
    %c0_i32_0 = arith.constant 0 : i32
    %2 = arith.cmpi ne, %1, %c0_i32_0 : i32
    scf.if %2 {
      %cst_11 = arith.constant 0.000000e+00 : f32
      %19 = vector.broadcast %cst_11 : f32 to vector<128x128xf32>
      %c0_12 = arith.constant 0 : index
      %c0_13 = arith.constant 0 : index
      %20 = vector.load %arg8[%c0_12, %c0_13] : memref<128x128xf32, #tpu.memory_space<vmem>>, vector<128x128xf32>
      tpu.vector_store %arg8[%c0_12, %c0_13], %19 {strides = array<i32>} : memref<128x128xf32, #tpu.memory_space<vmem>>, vector<128x128xf32>,
    } else {
    }
    %c0 = arith.constant 0 : index
    %c0_1 = arith.constant 0 : index
    %3 = vector.load %arg2[%c0, %c0_1] : memref<128x1xf32, #tpu.memory_space<vmem>>, vector<128x1xf32>
    %c0_2 = arith.constant 0 : index
    %c0_3 = arith.constant 0 : index
    %4 = vector.load %arg4[%c0_2, %c0_3] : memref<1x128xf32, #tpu.memory_space<vmem>>, vector<1x128xf32>
    %5 = vector.broadcast %4 : vector<1x128xf32> to vector<128x128xf32>
    %6 = vector.broadcast %3 : vector<128x1xf32> to vector<128x128xf32>
    %7 = arith.cmpf ogt, %5, %6 : vector<128x128xf32>
    %8 = arith.extui %7 : vector<128x128xi1> to vector<128x128xi32>
    %9 = arith.sitofp %8 : vector<128x128xi32> to vector<128x128xf32>
    %10 = arith.truncf %9 : vector<128x128xf32> to vector<128x128xbf16>
    %cst = arith.constant 1.000000e+00 : bf16
    %11 = vector.broadcast %cst : bf16 to vector<128x128xbf16>
    %c0_4 = arith.constant 0 : index
    %c0_5 = arith.constant 0 : index
    %12 = vector.load %arg8[%c0_4, %c0_5] : memref<128x128xf32, #tpu.memory_space<vmem>>, vector<128x128xf32>
    %cst_6 = arith.constant dense<0.000000e+00> : vector<128x128xf32>
    %13 = tpu.matmul %10, %11, %cst_6 {dimension_numbers = #tpu.dot_dimension_numbers<[1], [0], [0], [1], [0, 0, 1, 1], [], []>} : vector<128x128xbf16>, vector<128x128xbf16>, vector<128x128xf32> -> vector<128x128xf32>
    %14 = arith.addf %12, %13 : vector<128x128xf32>
    %c0_7 = arith.constant 0 : index
    %c0_8 = arith.constant 0 : index
    %15 = vector.load %arg8[%c0_7, %c0_8] : memref<128x128xf32, #tpu.memory_space<vmem>>, vector<128x128xf32>
    tpu.vector_store %arg8[%c0_7, %c0_8], %14 {strides = array<i32>} : memref<128x128xf32, #tpu.memory_space<vmem>>, vector<128x128xf32>,
    %c0_i32_9 = arith.constant 0 : i32
    %16 = arith.cmpi eq, %arg1, %c0_i32_9 : i32
    %17 = arith.extui %16 : i1 to i32
    %c0_i32_10 = arith.constant 0 : i32
    %18 = arith.cmpi ne, %17, %c0_i32_10 : i32
    scf.if %18 {
      %c0_11 = arith.constant 0 : index
      %c0_12 = arith.constant 0 : index
      %19 = vector.load %arg8[%c0_11, %c0_12] : memref<128x128xf32, #tpu.memory_space<vmem>>, vector<128x128xf32>
      %cst_13 = arith.constant 1.200000e+01 : f32
      %20 = vector.broadcast %cst_13 : f32 to vector<128x128xf32>
      %21 = arith.cmpf olt, %19, %20 : vector<128x128xf32>
      %cst_14 = arith.constant 3.000000e+00 : f32
      %cst_15 = arith.constant 1.000000e+00 : f32
      %22 = vector.broadcast %cst_14 : f32 to vector<128x128xf32>
      %23 = vector.broadcast %cst_15 : f32 to vector<128x128xf32>
      %24 = arith.select %21, %22, %23 : vector<128x128xi1>, vector<128x128xf32>
      %c0_16 = arith.constant 0 : index
      %c0_17 = arith.constant 0 : index
      %25 = vector.load %arg3[%c0_16, %c0_17] : memref<128x1xf32, #tpu.memory_space<vmem>>, vector<128x1xf32>
      %26 = arith.subf %3, %25 : vector<128x1xf32>
      %27 = arith.subf %3, %25 : vector<128x1xf32>
      %28 = arith.mulf %26, %27 : vector<128x1xf32>
      %29 = vector.broadcast %28 : vector<128x1xf32> to vector<128x128xf32>
      %30 = arith.mulf %29, %24 : vector<128x128xf32>
      %31 = tpu.iota {dimensions = array<i32: 0>} : vector<128x1xi32>
      %c128_i32 = arith.constant 128 : i32
      %32 = arith.muli %arg0, %c128_i32 : i32
      %33 = vector.broadcast %32 : i32 to vector<128x1xi32>
      %34 = arith.addi %31, %33 : vector<128x1xi32>
      %c16_i32 = arith.constant 16 : i32
      %35 = vector.broadcast %c16_i32 : i32 to vector<128x1xi32>
      %36 = arith.cmpi slt, %34, %35 : vector<128x1xi32>
      %cst_18 = arith.constant 0.000000e+00 : f32
      %37 = vector.shape_cast %36 : vector<128x1xi1> to vector<128x1xi1>
      %38 = vector.broadcast %37 : vector<128x1xi1> to vector<128x128xi1>
      %39 = vector.broadcast %cst_18 : f32 to vector<128x128xf32>
      %40 = arith.select %38, %30, %39 : vector<128x128xi1>, vector<128x128xf32>
      %cst_19 = arith.constant 3.000000e+00 : f32
      %41 = vector.broadcast %cst_19 : f32 to vector<128x128xf32>
      %42 = arith.cmpf oeq, %24, %41 : vector<128x128xf32>
      %43 = vector.broadcast %36 : vector<128x1xi1> to vector<128x128xi1>
      %44 = arith.andi %43, %42 : vector<128x128xi1>
      %45 = vector.shape_cast %40 : vector<128x128xf32> to vector<1x128x128xf32>
      %cst_20 = arith.constant dense<0.000000e+00> : vector<1xf32>
      %46 = vector.multi_reduction <add>, %45, %cst_20 [1, 2] : vector<1x128x128xf32> to vector<1xf32>
      %47 = vector.shape_cast %46 : vector<1xf32> to vector<1x1x1xf32>
      %48 = vector.extract %47[0, 0, 0] : f32 from vector<1x1x1xf32>
      %cst_21 = arith.constant 7.812500e-03 : f32
      %49 = arith.mulf %48, %cst_21 : f32
      %cst_22 = arith.constant 0.000000e+00 : f32
      %50 = vector.broadcast %cst_22 : f32 to vector<128x128xf32>
      %51 = arith.select %44, %30, %50 : vector<128x128xi1>, vector<128x128xf32>
      %52 = vector.shape_cast %51 : vector<128x128xf32> to vector<1x128x128xf32>
      %cst_23 = arith.constant dense<0.000000e+00> : vector<1xf32>
      %53 = vector.multi_reduction <add>, %52, %cst_23 [1, 2] : vector<1x128x128xf32> to vector<1xf32>
      %54 = vector.shape_cast %53 : vector<1xf32> to vector<1x1x1xf32>
      %55 = vector.extract %54[0, 0, 0] : f32 from vector<1x1x1xf32>
      %cst_24 = arith.constant 7.812500e-03 : f32
      %56 = arith.mulf %55, %cst_24 : f32
      %cst_25 = arith.constant 1.000000e+00 : f32
      %cst_26 = arith.constant 0.000000e+00 : f32
      %57 = vector.broadcast %cst_25 : f32 to vector<128x128xf32>
      %58 = vector.broadcast %cst_26 : f32 to vector<128x128xf32>
      %59 = arith.select %44, %57, %58 : vector<128x128xi1>, vector<128x128xf32>
      %60 = vector.shape_cast %59 : vector<128x128xf32> to vector<1x128x128xf32>
      %cst_27 = arith.constant dense<0.000000e+00> : vector<1xf32>
      %61 = vector.multi_reduction <add>, %60, %cst_27 [1, 2] : vector<1x128x128xf32> to vector<1xf32>
      %62 = vector.shape_cast %61 : vector<1xf32> to vector<1x1x1xf32>
      %63 = vector.extract %62[0, 0, 0] : f32 from vector<1x1x1xf32>
      %cst_28 = arith.constant 7.812500e-03 : f32
      %64 = arith.mulf %63, %cst_28 : f32
      %65 = vector.broadcast %49 : f32 to vector<1x8x128xf32>
      %c0_29 = arith.constant 0 : index
      %c0_30 = arith.constant 0 : index
      %c0_31 = arith.constant 0 : index
      %66 = vector.load %arg5[%c0_29, %c0_30, %c0_31] : memref<1x8x128xf32, #tpu.memory_space<vmem>>, vector<1x8x128xf32>
      tpu.vector_store %arg5[%c0_29, %c0_30, %c0_31], %65 {strides = array<i32>} : memref<1x8x128xf32, #tpu.memory_space<vmem>>, vector<1x8x128xf32>,
      %67 = vector.broadcast %56 : f32 to vector<1x8x128xf32>
      %c0_32 = arith.constant 0 : index
      %c0_33 = arith.constant 0 : index
      %c0_34 = arith.constant 0 : index
      %68 = vector.load %arg6[%c0_32, %c0_33, %c0_34] : memref<1x8x128xf32, #tpu.memory_space<vmem>>, vector<1x8x128xf32>
      tpu.vector_store %arg6[%c0_32, %c0_33, %c0_34], %67 {strides = array<i32>} : memref<1x8x128xf32, #tpu.memory_space<vmem>>, vector<1x8x128xf32>,
      %69 = vector.broadcast %64 : f32 to vector<1x8x128xf32>
      %c0_35 = arith.constant 0 : index
      %c0_36 = arith.constant 0 : index
      %c0_37 = arith.constant 0 : index
      %70 = vector.load %arg7[%c0_35, %c0_36, %c0_37] : memref<1x8x128xf32, #tpu.memory_space<vmem>>, vector<1x8x128xf32>
      tpu.vector_store %arg7[%c0_35, %c0_36, %c0_37], %69 {strides = array<i32>} : memref<1x8x128xf32, #tpu.memory_space<vmem>>, vector<1x8x128xf32>,
    } else {
    }
    return
  }
  func.func @transform_0(%arg0: i32, %arg1: i32) -> (i32, i32) {
    %c0_i32 = arith.constant 0 : i32
    %c0_i32_0 = arith.constant 0 : i32
    return %arg0, %c0_i32 : i32, i32
  }
  func.func @transform_1(%arg0: i32, %arg1: i32) -> (i32, i32) {
    %c0_i32 = arith.constant 0 : i32
    %c0_i32_0 = arith.constant 0 : i32
    return %arg0, %c0_i32 : i32, i32
  }
  func.func @transform_2(%arg0: i32, %arg1: i32) -> (i32, i32) {
    %c0_i32 = arith.constant 0 : i32
    %c0_i32_0 = arith.constant 0 : i32
    return %c0_i32, %arg1 : i32, i32
  }
  func.func @transform_3(%arg0: i32, %arg1: i32) -> (i32, i32, i32) {
    %c0_i32 = arith.constant 0 : i32
    %c0_i32_0 = arith.constant 0 : i32
    %c0_i32_1 = arith.constant 0 : i32
    return %arg0, %c0_i32, %c0_i32_0 : i32, i32, i32
  }
  func.func @transform_4(%arg0: i32, %arg1: i32) -> (i32, i32, i32) {
    %c0_i32 = arith.constant 0 : i32
    %c0_i32_0 = arith.constant 0 : i32
    %c0_i32_1 = arith.constant 0 : i32
    return %arg0, %c0_i32, %c0_i32_0 : i32, i32, i32
  }
  func.func @transform_5(%arg0: i32, %arg1: i32) -> (i32, i32, i32) {
    %c0_i32 = arith.constant 0 : i32
    %c0_i32_0 = arith.constant 0 : i32
    %c0_i32_1 = arith.constant 0 : i32
    return %arg0, %c0_i32, %c0_i32_0 : i32, i32, i32
  }
}

</mosaic_0001>

<bundles_post_ra>
// kernel: balanced_top_weighted_mse.1
= control target key start
LH: loop header
LB: loop body
LE: loop exit
PB: predicated region body
PF: predicated region fallthrough
CT: control target
= control target key end

     0   :  { %v904_v0 = vmov 0   ;;  %v905_v5 = vmov 1065369472   ;;  %v906_v29 = vmov 1.0|1.0   ;;  %v907_v46 = vmov 1.0   ;;  %s1037_s0 = inlined_call_operand.vmem [shape: f32[128,1], index: 0, kind: input, shape index: {}]   ;;  %s1038_s1 = inlined_call_operand.vmem [shape: f32[128,1], index: 1, kind: input, shape index: {}]   ;;  %s1039_s2 = inlined_call_operand.vmem [shape: f32[1,128], index: 2, kind: input, shape index: {}]   ;;  %s1040_s3 = inlined_call_operand.vmem [shape: f32[1,8,128], index: 3, kind: output, shape index: {0}]   ;;  %s1041_s4 = inlined_call_operand.vmem [shape: f32[1,8,128], index: 4, kind: output, shape index: {1}]   ;;  %s1042_s5 = inlined_call_operand.vmem [shape: f32[1,8,128], index: 5, kind: output, shape index: {2}]  }
   0x1   :  { %903 = vset.pattern.permute.xlu1 %v904_v0  ;;  %902 = vset.pattern.permute.xlu0 %v904_v0  ;;  %v41_v1 = vld [vmem:[%s1037_s0 + $0x10] sm:$0xff]  ;;  %v39_v2 = vld [vmem:[%s1037_s0] sm:$0xff]  ;;  %v42_v3 = vld [vmem:[%s1037_s0 + $0x18] sm:$0xff]  ;;  %v908_v55 = vmov 0.0  }
   0x2   :  { %74 = vperm.xlu1 %903, %v41_v1   ;;  %64 = vperm.xlu0 %902, %v39_v2   ;;  %v40_v4 = vld [vmem:[%s1037_s0 + $0x8] sm:$0xff]  ;;  %v47_v7 = vld [vmem:[%s1037_s0 + $0x40] sm:$0xff]  ;;  %v50_v8 = vld [vmem:[%s1037_s0 + $0x58] sm:$0xff] }
   0x3   :  { %843 = vmatprep.subr.bf16.mxu0 %v905_v5  ;;  %875 = vmatprep.subr.bf16.mxu1 %v905_v5  ;;  %v48_v6 = vld [vmem:[%s1037_s0 + $0x48] sm:$0xff]  ;;  %v49_v9 = vld [vmem:[%s1037_s0 + $0x50] sm:$0xff]  ;;  %v43_v11 = vld [vmem:[%s1037_s0 + $0x20] sm:$0xff] }
   0x4   :  { %844 = vmatpush3.bf16.msra.mxu0 %v905_v5  ;;  %883 = vmatpush3.bf16.msra.mxu1 %v905_v5  ;;  %v44_v10 = vld [vmem:[%s1037_s0 + $0x28] sm:$0xff]  ;;  %v51_v13 = vld [vmem:[%s1037_s0 + $0x60] sm:$0xff]  ;;  %v46_v16 = vld [vmem:[%s1037_s0 + $0x38] sm:$0xff] }
   0x5   :  { %845 = vmatprep.subr.bf16.mxu0 %v905_v5  ;;  %876 = vmatprep.subr.bf16.mxu1 %v905_v5  ;;  %v52_v12 = vld [vmem:[%s1037_s0 + $0x68] sm:$0xff]  ;;  %v394_v14 = vld [vmem:[%s1038_s1] sm:$0xff]  ;;  %v45_v17 = vld [vmem:[%s1037_s0 + $0x30] sm:$0xff] }
   0x6   :  { %79 = vperm.xlu1 %903, %v42_v3   ;;  %69 = vperm.xlu0 %902, %v40_v4   ;;  %v395_v15 = vld [vmem:[%s1038_s1 + $0x8] sm:$0xff]  ;;  %v410_v18 = vsub.f32 %v39_v2, %v394_v14  ;;  %v54_v20 = vld [vmem:[%s1037_s0 + $0x78] sm:$0xff]  ;;  %v53_v21 = vld [vmem:[%s1037_s0 + $0x70] sm:$0xff] }
   0x7   :  { %v411_v19 = vsub.f32 %v40_v4, %v395_v15  ;;  %v794_v26 = vld [vmem:[%s1039_s2] ss:$0 sm:$0xff] }
   0x8   :  { %846 = vmatpush3.bf16.msra.mxu0 %v905_v5  ;;  %884 = vmatpush3.bf16.msra.mxu1 %v905_v5  ;;  %v426_v22 = vmul.f32 %v410_v18, %v410_v18 }
   0x9   :  { %847 = vmatprep.subr.bf16.mxu0 %v905_v5  ;;  %877 = vmatprep.subr.bf16.mxu1 %v905_v5  ;;  %v427_v23 = vmul.f32 %v411_v19, %v411_v19 }
   0xa   :  { %109 = vperm.xlu1 %903, %v48_v6   ;;  %104 = vperm.xlu0 %902, %v47_v7  }
   0xc   :  { %848 = vmatpush3.bf16.msra.mxu0 %v905_v5  ;;  %885 = vmatpush3.bf16.msra.mxu1 %v905_v5 }
   0xd   :  { %849 = vmatprep.subr.bf16.mxu0 %v905_v5  ;;  %878 = vmatprep.subr.bf16.mxu1 %v905_v5 }
   0xe   :  { %119 = vperm.xlu1 %903, %v50_v8   ;;  %114 = vperm.xlu0 %902, %v49_v9  }
  0x10   :  { %850 = vmatpush3.bf16.msra.mxu0 %v905_v5  ;;  %886 = vmatpush3.bf16.msra.mxu1 %v905_v5 }
  0x11   :  { %851 = vmatprep.subr.bf16.mxu0 %v905_v5  ;;  %879 = vmatprep.subr.bf16.mxu1 %v905_v5 }
  0x12   :  { %89 = vperm.xlu1 %903, %v44_v10   ;;  %84 = vperm.xlu0 %902, %v43_v11  }
  0x14   :  { %852 = vmatpush3.bf16.msra.mxu0 %v905_v5  ;;  %887 = vmatpush3.bf16.msra.mxu1 %v905_v5 }
  0x15   :  { %853 = vmatprep.subr.bf16.mxu0 %v905_v5  ;;  %880 = vmatprep.subr.bf16.mxu1 %v905_v5 }
  0x16   :  { %129 = vperm.xlu1 %903, %v52_v12   ;;  %124 = vperm.xlu0 %902, %v51_v13  }
  0x18   :  { %854 = vmatpush3.bf16.msra.mxu0 %v905_v5  ;;  %888 = vmatpush3.bf16.msra.mxu1 %v905_v5 }
  0x19   :  { %855 = vmatprep.subr.bf16.mxu0 %v905_v5  ;;  %881 = vmatprep.subr.bf16.mxu1 %v905_v5 }
  0x1a   :  { %99 = vperm.xlu1 %903, %v46_v16   ;;  %94 = vperm.xlu0 %902, %v45_v17  }
  0x1c   :  { %856 = vmatpush3.bf16.msra.mxu0 %v905_v5  ;;  %889 = vmatpush3.bf16.msra.mxu1 %v905_v5 }
  0x1d   :  { %857 = vmatprep.subr.bf16.mxu0 %v905_v5  ;;  %882 = vmatprep.subr.bf16.mxu1 %v905_v5 }
  0x1e   :  { %139 = vperm.xlu1 %903, %v54_v20   ;;  %134 = vperm.xlu0 %902, %v53_v21  }
  0x20   :  { %858 = vmatpush3.bf16.msra.mxu0 %v905_v5  ;;  %890 = vmatpush3.bf16.msra.mxu1 %v905_v5 }
  0x22   :  { %449 = vperm.xlu1 %903, %v427_v23   ;;  %444 = vperm.xlu0 %902, %v426_v22  }
  0x81   :  { %v75_v24 = vpop.permute.xlu1 %74  ;;  %v65_v25 = vpop.permute.xlu0 %64 }
  0x82   :  { %vm144_vm0 = vcmp.gt.f32.partialorder %v794_v26, %v75_v24  ;;  %vm142_vm3 = vcmp.gt.f32.partialorder %v794_v26, %v65_v25 }
  0x85   :  { %v80_v27 = vpop.permute.xlu1 %79  ;;  %v70_v28 = vpop.permute.xlu0 %69 }
  0x86   :  { %vm145_vm1 = vcmp.gt.f32.partialorder %v794_v26, %v80_v27  ;;  %vm143_vm2 = vcmp.gt.f32.partialorder %v794_v26, %v70_v28 }
  0x87   :  { %vm813_vm4 = vmpackc.low %vm145_vm1, %vm144_vm0 }
  0x88   :  { %vm811_vm5 = vmpackc.low %vm143_vm2, %vm142_vm3 }
  0x89   :  { %859 = vmatprep.mubr.msk.bf16.mxu0 %vm811_vm5, %v906_v29  ;;  %v110_v30 = vpop.permute.xlu1 %109  ;;  %v105_v31 = vpop.permute.xlu0 %104 }
  0x8a   :  { %vm151_vm6 = vcmp.gt.f32.partialorder %v794_v26, %v110_v30  ;;  %860 = vmatmul.mubr.msk.bf16.vlgmr.msra.gmra.mrb[0].mxu0 %vm813_vm4, %v906_v29  ;;  %vm150_vm7 = vcmp.gt.f32.partialorder %v794_v26, %v105_v31 }
  0x8b   :  { %vm819_vm8 = vmpackc.low %vm151_vm6, %vm150_vm7 }
  0x8c   :  { %867 = vmatprep.mubr.msk.bf16.mxu1 %vm819_vm8, %v906_v29 }
  0x8d   :  { %v120_v32 = vpop.permute.xlu1 %119  ;;  %v115_v33 = vpop.permute.xlu0 %114 }
  0x8e   :  { %vm153_vm9 = vcmp.gt.f32.partialorder %v794_v26, %v120_v32  ;;  %vm152_vm10 = vcmp.gt.f32.partialorder %v794_v26, %v115_v33 }
  0x8f   :  { %vm821_vm11 = vmpackc.low %vm153_vm9, %vm152_vm10 }
  0x90   :  { %868 = vmatmul.mubr.msk.bf16.vlgmr.msra.gmra.mrb[0].mxu1 %vm821_vm11, %v906_v29 }
  0x91   :  { %v90_v34 = vpop.permute.xlu1 %89  ;;  %v85_v35 = vpop.permute.xlu0 %84 }
  0x92   :  { %vm147_vm12 = vcmp.gt.f32.partialorder %v794_v26, %v90_v34  ;;  %vm146_vm13 = vcmp.gt.f32.partialorder %v794_v26, %v85_v35 }
  0x93   :  { %vm815_vm14 = vmpackc.low %vm147_vm12, %vm146_vm13 }
  0x94   :  { %863 = vmatprep.mubr.msk.bf16.mxu0 %vm815_vm14, %v906_v29 }
  0x95   :  { %v130_v36 = vpop.permute.xlu1 %129  ;;  %v125_v37 = vpop.permute.xlu0 %124 }
  0x96   :  { %vm155_vm15 = vcmp.gt.f32.partialorder %v794_v26, %v130_v36  ;;  %vm154_vm0 = vcmp.gt.f32.partialorder %v794_v26, %v125_v37 }
  0x97   :  { %vm823_vm1 = vmpackc.low %vm155_vm15, %vm154_vm0 }
  0x98   :  { %871 = vmatprep.mubr.msk.bf16.mxu1 %vm823_vm1, %v906_v29 }
  0x99   :  { %v100_v38 = vpop.permute.xlu1 %99  ;;  %v95_v39 = vpop.permute.xlu0 %94 }
  0x9a   :  { %vm149_vm2 = vcmp.gt.f32.partialorder %v794_v26, %v100_v38  ;;  %vm148_vm3 = vcmp.gt.f32.partialorder %v794_v26, %v95_v39 }
  0x9b   :  { %vm817_vm4 = vmpackc.low %vm149_vm2, %vm148_vm3 }
  0x9c   :  { %864 = vmatmul.mubr.msk.bf16.gmra.mrb[4].mxu0 %vm817_vm4, %v906_v29 }
  0x9d   :  { %v140_v40 = vpop.permute.xlu1 %139  ;;  %v135_v41 = vpop.permute.xlu0 %134 }
  0x9e   :  { %vm157_vm5 = vcmp.gt.f32.partialorder %v794_v26, %v140_v40  ;;  %vm156_vm6 = vcmp.gt.f32.partialorder %v794_v26, %v135_v41 }
  0x9f   :  { %vm825_vm7 = vmpackc.low %vm157_vm5, %vm156_vm6 }
  0xa0   :  { %872 = vmatmul.mubr.msk.bf16.gmra.mrb[4].mxu1 %vm825_vm7, %v906_v29 }
  0xa1   :  { %v445_v45 = vpop.permute.xlu0 %444  ;;  %v450_v50 = vpop.permute.xlu1 %449 }
 0x15d   :  { %v861_v42 = vpop.f32.mrb[0].mxu0 }
 0x15e   :  { %v248_v43 = vpop.f32.mrb[1].mxu0 }
 0x15f   :  { %vm362_vm8 = vcmp.lt.f32.partialorder %v248_v43, 12.0  ;;  %v862_v44 = vpop.f32.mrb[2].mxu0 }
 0x160   :  { %v378_v47 = vsel %vm362_vm8, 3.0, %v907_v46  ;;  %v251_v48 = vpop.f32.mrb[3].mxu0 }
 0x161   :  { %v522_v49 = vmul.f32 %v445_v45, %v378_v47  ;;  %vm637_vm9 = vcmp.eq.f32.partialorder %v378_v47, 3.0  ;;  %vm363_vm10 = vcmp.lt.f32.partialorder %v251_v48, 12.0 }
 0x162   :  { %v379_v51 = vsel %vm363_vm10, 3.0, %v907_v46  ;;  %v735_v56 = vsel %vm637_vm9, 1.0, %v908_v55 }
 0x163   :  { %v523_v52 = vmul.f32 %v450_v50, %v379_v51  ;;  %vm638_vm11 = vcmp.eq.f32.partialorder %v379_v51, 3.0  ;;  %v869_v53 = vpop.f32.mrb[0].mxu1  ;;  %v694_v60 = vsel %vm637_vm9, %v522_v49, 0.0 }
 0x164   :  { %v280_v54 = vpop.f32.mrb[1].mxu1  ;;  %v736_v57 = vsel %vm638_vm11, 1.0, %v908_v55 }
 0x165   :  { %v870_v58 = vpop.f32.mrb[2].mxu1  ;;  %v669_v59 = vadd.f32 %v523_v52, %v522_v49  ;;  %v695_v61 = vsel %vm638_vm11, %v523_v52, 0.0  ;;  %v751_v62 = vadd.f32 %v736_v57, %v735_v56 }
 0x166   :  { %v283_v63 = vpop.f32.mrb[3].mxu1  ;;  %v710_v0 = vadd.f32 %v695_v61, %v694_v60 }
 0x167   :  { %684 = vadd.xlane.f32.xlu0 %v669_v59 }
 0x168   :  { %725 = vadd.xlane.f32.xlu1 %v710_v0 }
 0x16b   :  { %766 = vadd.xlane.f32.xlu0 %v751_v62 }
 0x16f   :  { %v865_v1 = vpop.f32.mrb[4].mxu0 }
 0x170   :  { %v264_v2 = vpop.f32.mrb[5].mxu0 }
 0x171   :  { %v866_v3 = vpop.f32.mrb[6].mxu0 }
 0x172   :  { %v267_v4 = vpop.f32.mrb[7].mxu0 }
 0x173   :  { %v873_v5 = vpop.f32.mrb[4].mxu1 }
 0x174   :  { %v296_v6 = vpop.f32.mrb[5].mxu1 }
 0x175   :  { %v874_v7 = vpop.f32.mrb[6].mxu1 }
 0x176   :  { %v299_v8 = vpop.f32.mrb[7].mxu1 }
 0x1f4   :  { %v685_v9 = vpop.xlane.xlu0 %684 }
 0x1f5   :  { %v686_v10 = vrot.slane %v685_v9, 4  ;;  %v726_v11 = vpop.xlane.xlu1 %725 }
 0x1f6   :  { %v727_v12 = vrot.slane %v726_v11, 4 }
 0x1f7   :  { %v687_v13 = vadd.f32 %v686_v10, %v685_v9 }
 0x1f8   :  { %v728_v14 = vadd.f32 %v727_v12, %v726_v11  ;;  %v767_v15 = vpop.xlane.xlu0 %766 }
 0x1f9   :  { %v688_v16 = vrot.slane %v687_v13, 2  ;;  %v768_v17 = vrot.slane %v767_v15, 4 }
 0x1fa   :  { %v729_v18 = vrot.slane %v728_v14, 2 }
 0x1fb   :  { %v769_v19 = vadd.f32 %v768_v17, %v767_v15  ;;  %v689_v20 = vadd.f32 %v688_v16, %v687_v13 }
 0x1fc   :  { %v730_v21 = vadd.f32 %v729_v18, %v728_v14 }
 0x1fd   :  { %v770_v22 = vrot.slane %v769_v19, 2  ;;  %v690_v23 = vrot.slane %v689_v20, 1 }
 0x1fe   :  { %v731_v24 = vrot.slane %v730_v21, 1 }
 0x1ff   :  { %v771_v25 = vadd.f32 %v770_v22, %v769_v19  ;;  %v691_v26 = vadd.f32 %v690_v23, %v689_v20 }
 0x200   :  { %v732_v27 = vadd.f32 %v731_v24, %v730_v21 }
 0x201   :  { %891 = vpush %v691_v26  ;;  %v772_v28 = vrot.slane %v771_v25, 1 }
 0x202   :  { %893 = vpush %v732_v27 }
 0x203   :  { %v773_v29 = vadd.f32 %v772_v28, %v771_v25 }
 0x205   :  { %895 = vpush %v773_v29 }
 0x232   :  { %s892_s2 = spop %891 }
 0x233   :  { %s693_s29 = smul.f32 0.0078125, %s892_s2  ;;  %s894_s30 = spop %893 }
 0x234   :  { %s734_s6 = smul.f32 0.0078125, %s894_s30 }
 0x235   :  { %v776_v30 = vstv %s693_s29 }
 0x236   :  { %777 = vst [vmem:[%s1040_s3] sm:$0xff] %v776_v30  ;;  %v778_v31 = vstv %s734_s6  ;;  %s896_s9 = spop %895 }
 0x237   :  { %779 = vst [vmem:[%s1041_s4] sm:$0xff] %v778_v31  ;;  %s775_s12 = smul.f32 0.0078125, %s896_s9 }
 0x239   :  { %v780_v32 = vstv %s775_s12 }
 0x23a   :  { %781 = vst [vmem:[%s1042_s5] sm:$0xff] %v780_v32 }

</bundles_post_ra>
